<compile_context>
chip_gen: v6e
topology: v6e:2x2x1
jax: 0.10.0
libtpu: 0.0.40
codegen_flags: <defaults>
</compile_context>

<pallas_src>
import math
import functools

import jax
import jax.numpy as jnp
from jax.experimental import pallas as pl
from jax.experimental.pallas import tpu as pltpu


def _attention_kernel(q_ref, kv_ref, wq_ref, wkv_ref, wo_ref, bo_ref,
                      o_ref, ctx_ref, *, n_head, d_hidden):
    # Shapes (single grid step, whole problem resident in VMEM):
    #   q_ref:  (B, Q, d_query)          kv_ref: (2, B, K, d_key)
    #   wq_ref: (d_query, H*D)           wkv_ref: (2, d_key, H*D)
    #   wo_ref: (H*D, d_query)           bo_ref: (1, d_query)
    #   o_ref:  (B, Q, d_query)          ctx_ref (scratch): (B*Q, H*D) f32
    B, Q, dq = q_ref.shape
    _, _, K, dk = kv_ref.shape
    H, D = n_head, d_hidden
    HD = H * D

    # ---- Lane-dense projections: one (rows, d_in) @ (d_in, H*D) matmul each.
    # (leading-dim-only reshapes -> no lane relayout; scaling folded into Wq.)
    q2 = q_ref[...].reshape(B * Q, dq)
    k2 = kv_ref[0].reshape(B * K, dk)
    v2 = kv_ref[1].reshape(B * K, dk)

    qp = jnp.dot(q2, wq_ref[...], preferred_element_type=jnp.float32).reshape(B, Q, HD)
    kp = jnp.dot(k2, wkv_ref[0], preferred_element_type=jnp.float32).reshape(B, K, HD)
    vp = jnp.dot(v2, wkv_ref[1], preferred_element_type=jnp.float32).reshape(B, K, HD)

    # ---- Per-head attention on tiny (Q, K) tiles; softmax math in f32 (exact).
    # Static lane slices (offsets h*D) pull each head out of the packed slab;
    # per-head context is written back at the matching lane offset so the
    # output projection sees one lane-dense (B*Q, H*D) operand.
    for h in range(H):
        lo = h * D
        qh = qp[:, :, lo:lo + D]                                    # (B, Q, D)
        kh = kp[:, :, lo:lo + D]                                    # (B, K, D)
        vh = vp[:, :, lo:lo + D]                                    # (B, K, D)
        s = jnp.einsum('bqd,bkd->bqk', qh, kh,
                       preferred_element_type=jnp.float32)          # (B, Q, K)
        m = jnp.max(s, axis=-1, keepdims=True)
        e = jnp.exp(s - m)
        w = e / jnp.sum(e, axis=-1, keepdims=True)                  # exact softmax
        ctx_h = jnp.einsum('bqk,bkd->bqd', w, vh,
                           preferred_element_type=jnp.float32)      # (B, Q, D)
        ctx_ref[:, lo:lo + D] = ctx_h.reshape(B * Q, D)

    # ---- Fused output projection: single full-128-lane contraction + bias.
    ctx = ctx_ref[...].astype(wo_ref.dtype)
    out = jnp.dot(ctx, wo_ref[...], preferred_element_type=jnp.float32) + bo_ref[...]
    o_ref[...] = out.reshape(B, Q, dq).astype(o_ref.dtype)


def attention_forward(query, key, value, dm_embeds, params, *,
                      n_head, d_hidden, mxu_dtype=None):
    # dm_embeds is unused by the reference forward; kept for signature parity.
    del dm_embeds
    B, Q, d_query = query.shape
    _, K, d_key = key.shape
    H, D = n_head, d_hidden
    HD = H * D
    scaling = 1.0 / math.sqrt(d_hidden)

    wq, wk, wv, wo, bo = params  # PyTorch nn.Linear layout: W (out, in), b (out,)

    # Optional low-precision MXU operands (recommended bf16 on v6e/v7x).
    w_dtype = mxu_dtype if mxu_dtype is not None else wq.dtype
    a_dtype = mxu_dtype if mxu_dtype is not None else query.dtype

    # One-time host-side relayout (plain XLA ops, outside the hot kernel):
    #   - fold scaling into the query projection weights
    #   - transpose to (in, out) so every in-kernel matmul is a clean A @ W
    #   - stack K/V activations and Wk/Wv weights -> fewer DMA streams.
    wq_p = (wq * scaling).T.astype(w_dtype)                      # (d_query, H*D)
    wkv_p = jnp.stack([wk.T, wv.T], axis=0).astype(w_dtype)      # (2, d_key, H*D)
    wo_p = wo.T.astype(w_dtype)                                  # (H*D, d_query)
    bo2d = bo.reshape(1, d_query).astype(jnp.float32)            # (1, d_query)

    q_in = query.astype(a_dtype)
    kv_in = jnp.stack([key, value], axis=0).astype(a_dtype)      # (2, B, K, d_key)

    kernel = functools.partial(_attention_kernel, n_head=H, d_hidden=D)

    # Whole problem in one grid step: at these shapes per-step setup + DMA
    # issue/wait latency dominates, and everything fits comfortably in VMEM.
    grid_spec = pltpu.PrefetchScalarGridSpec(
        num_scalar_prefetch=0,
        grid=(1,),
        in_specs=[
            pl.BlockSpec((B, Q, d_query), lambda i: (0, 0, 0)),      # query
            pl.BlockSpec((2, B, K, d_key), lambda i: (0, 0, 0, 0)),  # key+value
            pl.BlockSpec((d_query, HD), lambda i: (0, 0)),           # Wq (scaled)
            pl.BlockSpec((2, d_key, HD), lambda i: (0, 0, 0)),       # Wk+Wv
            pl.BlockSpec((HD, d_query), lambda i: (0, 0)),           # Wo
            pl.BlockSpec((1, d_query), lambda i: (0, 0)),            # bo
        ],
        out_specs=pl.BlockSpec((B, Q, d_query), lambda i: (0, 0, 0)),
        scratch_shapes=[pltpu.VMEM((B * Q, HD), jnp.float32)],       # packed ctx
    )

    return pl.pallas_call(
        kernel,
        out_shape=jax.ShapeDtypeStruct((B, Q, d_query), query.dtype),
        grid_spec=grid_spec,
        compiler_params=pltpu.CompilerParams(dimension_semantics=("arbitrary",)),
    )(q_in, kv_in, wq_p, wkv_p, wo_p, bo2d)


def xavier_uniform(key, out_features, in_features, dtype=jnp.float32):
    limit = math.sqrt(6.0 / (in_features + out_features))
    return jax.random.uniform(key, (out_features, in_features),
                              dtype=dtype, minval=-limit, maxval=limit)


def reference_forward(query, key, value, params, *, n_head, d_hidden):
    # Pure-JAX reference mirroring the PyTorch forward (dropout = identity).
    wq, wk, wv, wo, bo = params
    B, Q, _ = query.shape
    _, K, _ = key.shape
    scaling = 1.0 / math.sqrt(d_hidden)
    qp = (query @ wq.T).reshape(B, Q, n_head, d_hidden) * scaling
    kp = (key @ wk.T).reshape(B, K, n_head, d_hidden)
    vp = (value @ wv.T).reshape(B, K, n_head, d_hidden)
    scores = jnp.einsum('bqhd,bkhd->bhqk', qp, kp)
    w = jax.nn.softmax(scores, axis=-1)
    out = jnp.einsum('bhqk,bkhd->bqhd', w, vp).reshape(B, Q, n_head * d_hidden)
    return out @ wo.T + bo


if __name__ == "__main__":
    # Small shapes consistent with the module.
    B, Q, K = 2, 8, 8
    d_query, d_key = 32, 32
    n_head, d_hidden = 4, 32        # H*D = 128

    root = jax.random.PRNGKey(0)
    k_q, k_k, k_v, k_wq, k_wk, k_wv, k_wo, k_dm = jax.random.split(root, 8)

    query = jax.random.normal(k_q, (B, Q, d_query), dtype=jnp.float32)
    key_ = jax.random.normal(k_k, (B, K, d_key), dtype=jnp.float32)
    value = jax.random.normal(k_v, (B, K, d_key), dtype=jnp.float32)
    dm_embeds = jax.random.normal(k_dm, (B, Q, 8), dtype=jnp.float32)  # unused by forward

    HD = n_head * d_hidden
    wq = xavier_uniform(k_wq, HD, d_query)
    wk = xavier_uniform(k_wk, HD, d_key)
    wv = xavier_uniform(k_wv, HD, d_key)
    wo = xavier_uniform(k_wo, d_query, HD)
    bo = jnp.zeros((d_query,), dtype=jnp.float32)
    params = (wq, wk, wv, wo, bo)

    out = attention_forward(query, key_, value, dm_embeds, params,
                            n_head=n_head, d_hidden=d_hidden)
    out = jax.block_until_ready(out)

    ref = reference_forward(query, key_, value, params,
                            n_head=n_head, d_hidden=d_hidden)
    assert out.shape == (B, Q, d_query)
    assert jnp.allclose(out, ref, atol=2e-3, rtol=2e-3), "mismatch vs pure-JAX reference"

    print("KERNEL_OK")
</pallas_src>

<mosaic_0001>
module attributes {stable_mosaic.version = 11 : i64} {
  func.func @_attention_kernel(%arg0: i32, %arg1: memref<2x8x32xf32, #tpu.memory_space<vmem>>, %arg2: memref<2x2x8x32xf32, #tpu.memory_space<vmem>>, %arg3: memref<32x128xf32, #tpu.memory_space<vmem>>, %arg4: memref<2x32x128xf32, #tpu.memory_space<vmem>>, %arg5: memref<128x32xf32, #tpu.memory_space<vmem>>, %arg6: memref<1x32xf32, #tpu.memory_space<vmem>>, %arg7: memref<2x8x32xf32, #tpu.memory_space<vmem>>, %arg8: memref<16x128xf32, #tpu.memory_space<vmem>>) attributes {dimension_semantics = [#tpu.dimension_semantics<arbitrary>], iteration_bounds = array<i64: 1>, scalar_prefetch = 0 : i64, scratch_operands = 1 : i64, tpu.core_type = #tpu.core_type<tc>, window_params = [{pipeline_mode = #tpu.pipeline_mode<synchronous>, transform_indices = @transform_0, window_bounds = array<i64: 2, 8, 32>}, {pipeline_mode = #tpu.pipeline_mode<synchronous>, transform_indices = @transform_1, window_bounds = array<i64: 2, 2, 8, 32>}, {pipeline_mode = #tpu.pipeline_mode<synchronous>, transform_indices = @transform_2, window_bounds = array<i64: 32, 128>}, {pipeline_mode = #tpu.pipeline_mode<synchronous>, transform_indices = @transform_3, window_bounds = array<i64: 2, 32, 128>}, {pipeline_mode = #tpu.pipeline_mode<synchronous>, transform_indices = @transform_4, window_bounds = array<i64: 128, 32>}, {pipeline_mode = #tpu.pipeline_mode<synchronous>, transform_indices = @transform_5, window_bounds = array<i64: 1, 32>}, {pipeline_mode = #tpu.pipeline_mode<synchronous>, transform_indices = @transform_6, window_bounds = array<i64: 2, 8, 32>}]} {
    %c0 = arith.constant 0 : index
    %c0_0 = arith.constant 0 : index
    %c0_1 = arith.constant 0 : index
    %0 = vector.load %arg1[%c0, %c0_0, %c0_1] : memref<2x8x32xf32, #tpu.memory_space<vmem>>, vector<2x8x32xf32>
    %1 = vector.shape_cast %0 : vector<2x8x32xf32> to vector<16x32xf32>
    %c0_2 = arith.constant 0 : index
    %c0_3 = arith.constant 0 : index
    %c0_4 = arith.constant 0 : index
    %c0_5 = arith.constant 0 : index
    %2 = vector.load %arg2[%c0_2, %c0_3, %c0_4, %c0_5] : memref<2x2x8x32xf32, #tpu.memory_space<vmem>>, vector<1x2x8x32xf32>
    %3 = vector.shape_cast %2 : vector<1x2x8x32xf32> to vector<2x8x32xf32>
    %4 = vector.shape_cast %3 : vector<2x8x32xf32> to vector<16x32xf32>
    %c1 = arith.constant 1 : index
    %c0_6 = arith.constant 0 : index
    %c0_7 = arith.constant 0 : index
    %c0_8 = arith.constant 0 : index
    %5 = vector.load %arg2[%c1, %c0_6, %c0_7, %c0_8] : memref<2x2x8x32xf32, #tpu.memory_space<vmem>>, vector<1x2x8x32xf32>
    %6 = vector.shape_cast %5 : vector<1x2x8x32xf32> to vector<2x8x32xf32>
    %7 = vector.shape_cast %6 : vector<2x8x32xf32> to vector<16x32xf32>
    %c0_9 = arith.constant 0 : index
    %c0_10 = arith.constant 0 : index
    %8 = vector.load %arg3[%c0_9, %c0_10] : memref<32x128xf32, #tpu.memory_space<vmem>>, vector<32x128xf32>
    %cst = arith.constant dense<0.000000e+00> : vector<16x128xf32>
    %9 = tpu.matmul %1, %8, %cst {dimension_numbers = #tpu.dot_dimension_numbers<[1], [0], [0], [1], [0, 0, 1, 1], [], []>} : vector<16x32xf32>, vector<32x128xf32>, vector<16x128xf32> -> vector<16x128xf32>
    %10 = vector.shape_cast %9 : vector<16x128xf32> to vector<2x8x128xf32>
    %c0_11 = arith.constant 0 : index
    %c0_12 = arith.constant 0 : index
    %c0_13 = arith.constant 0 : index
    %11 = vector.load %arg4[%c0_11, %c0_12, %c0_13] : memref<2x32x128xf32, #tpu.memory_space<vmem>>, vector<1x32x128xf32>
    %12 = vector.shape_cast %11 : vector<1x32x128xf32> to vector<32x128xf32>
    %cst_14 = arith.constant dense<0.000000e+00> : vector<16x128xf32>
    %13 = tpu.matmul %4, %12, %cst_14 {dimension_numbers = #tpu.dot_dimension_numbers<[1], [0], [0], [1], [0, 0, 1, 1], [], []>} : vector<16x32xf32>, vector<32x128xf32>, vector<16x128xf32> -> vector<16x128xf32>
    %14 = vector.shape_cast %13 : vector<16x128xf32> to vector<2x8x128xf32>
    %c1_15 = arith.constant 1 : index
    %c0_16 = arith.constant 0 : index
    %c0_17 = arith.constant 0 : index
    %15 = vector.load %arg4[%c1_15, %c0_16, %c0_17] : memref<2x32x128xf32, #tpu.memory_space<vmem>>, vector<1x32x128xf32>
    %16 = vector.shape_cast %15 : vector<1x32x128xf32> to vector<32x128xf32>
    %cst_18 = arith.constant dense<0.000000e+00> : vector<16x128xf32>
    %17 = tpu.matmul %7, %16, %cst_18 {dimension_numbers = #tpu.dot_dimension_numbers<[1], [0], [0], [1], [0, 0, 1, 1], [], []>} : vector<16x32xf32>, vector<32x128xf32>, vector<16x128xf32> -> vector<16x128xf32>
    %18 = vector.shape_cast %17 : vector<16x128xf32> to vector<2x8x128xf32>
    %19 = vector.extract_strided_slice %10 {offsets = [0, 0, 0], sizes = [2, 8, 32], strides = [1, 1, 1]} : vector<2x8x128xf32> to vector<2x8x32xf32>
    %20 = vector.extract_strided_slice %14 {offsets = [0, 0, 0], sizes = [2, 8, 32], strides = [1, 1, 1]} : vector<2x8x128xf32> to vector<2x8x32xf32>
    %21 = vector.extract_strided_slice %18 {offsets = [0, 0, 0], sizes = [2, 8, 32], strides = [1, 1, 1]} : vector<2x8x128xf32> to vector<2x8x32xf32>
    "tpu.trace_start"() <{level = 10 : i32, message = "bqd,bkd->bqk"}> : () -> ()
    %cst_19 = arith.constant dense<0.000000e+00> : vector<2x8x8xf32>
    %22 = tpu.matmul %19, %20, %cst_19 {dimension_numbers = #tpu.dot_dimension_numbers<[2], [2], [1], [1], [0, 0, 0, 1, 1, 1], [0], [0]>} : vector<2x8x32xf32>, vector<2x8x32xf32>, vector<2x8x8xf32> -> vector<2x8x8xf32>
    "tpu.trace_stop"() : () -> ()
    %cst_20 = arith.constant dense<0xFF800000> : vector<2x8xf32>
    %23 = vector.multi_reduction <maximumf>, %22, %cst_20 [2] : vector<2x8x8xf32> to vector<2x8xf32>
    %24 = vector.shape_cast %23 : vector<2x8xf32> to vector<2x8x1xf32>
    %25 = vector.broadcast %24 : vector<2x8x1xf32> to vector<2x8x8xf32>
    %26 = arith.subf %22, %25 : vector<2x8x8xf32>
    %27 = math.exp %26 : vector<2x8x8xf32>
    %cst_21 = arith.constant dense<0.000000e+00> : vector<2x8xf32>
    %28 = vector.multi_reduction <add>, %27, %cst_21 [2] : vector<2x8x8xf32> to vector<2x8xf32>
    %29 = vector.shape_cast %28 : vector<2x8xf32> to vector<2x8x1xf32>
    %30 = vector.broadcast %29 : vector<2x8x1xf32> to vector<2x8x8xf32>
    %31 = arith.divf %27, %30 : vector<2x8x8xf32>
    "tpu.trace_start"() <{level = 10 : i32, message = "bqk,bkd->bqd"}> : () -> ()
    %cst_22 = arith.constant dense<0.000000e+00> : vector<2x8x32xf32>
    %32 = tpu.matmul %31, %21, %cst_22 {dimension_numbers = #tpu.dot_dimension_numbers<[2], [1], [1], [2], [0, 0, 0, 1, 1, 2], [0], [0]>} : vector<2x8x8xf32>, vector<2x8x32xf32>, vector<2x8x32xf32> -> vector<2x8x32xf32>
    "tpu.trace_stop"() : () -> ()
    %33 = vector.shape_cast %32 : vector<2x8x32xf32> to vector<16x32xf32>
    %c0_23 = arith.constant 0 : index
    %c0_24 = arith.constant 0 : index
    %34 = vector.load %arg8[%c0_23, %c0_24] : memref<16x128xf32, #tpu.memory_space<vmem>>, vector<16x32xf32>
    tpu.vector_store %arg8[%c0_23, %c0_24], %33 {strides = array<i32>} : memref<16x128xf32, #tpu.memory_space<vmem>>, vector<16x32xf32>,
    %35 = vector.extract_strided_slice %10 {offsets = [0, 0, 32], sizes = [2, 8, 32], strides = [1, 1, 1]} : vector<2x8x128xf32> to vector<2x8x32xf32>
    %36 = vector.extract_strided_slice %14 {offsets = [0, 0, 32], sizes = [2, 8, 32], strides = [1, 1, 1]} : vector<2x8x128xf32> to vector<2x8x32xf32>
    %37 = vector.extract_strided_slice %18 {offsets = [0, 0, 32], sizes = [2, 8, 32], strides = [1, 1, 1]} : vector<2x8x128xf32> to vector<2x8x32xf32>
    "tpu.trace_start"() <{level = 10 : i32, message = "bqd,bkd->bqk"}> : () -> ()
    %cst_25 = arith.constant dense<0.000000e+00> : vector<2x8x8xf32>
    %38 = tpu.matmul %35, %36, %cst_25 {dimension_numbers = #tpu.dot_dimension_numbers<[2], [2], [1], [1], [0, 0, 0, 1, 1, 1], [0], [0]>} : vector<2x8x32xf32>, vector<2x8x32xf32>, vector<2x8x8xf32> -> vector<2x8x8xf32>
    "tpu.trace_stop"() : () -> ()
    %cst_26 = arith.constant dense<0xFF800000> : vector<2x8xf32>
    %39 = vector.multi_reduction <maximumf>, %38, %cst_26 [2] : vector<2x8x8xf32> to vector<2x8xf32>
    %40 = vector.shape_cast %39 : vector<2x8xf32> to vector<2x8x1xf32>
    %41 = vector.broadcast %40 : vector<2x8x1xf32> to vector<2x8x8xf32>
    %42 = arith.subf %38, %41 : vector<2x8x8xf32>
    %43 = math.exp %42 : vector<2x8x8xf32>
    %cst_27 = arith.constant dense<0.000000e+00> : vector<2x8xf32>
    %44 = vector.multi_reduction <add>, %43, %cst_27 [2] : vector<2x8x8xf32> to vector<2x8xf32>
    %45 = vector.shape_cast %44 : vector<2x8xf32> to vector<2x8x1xf32>
    %46 = vector.broadcast %45 : vector<2x8x1xf32> to vector<2x8x8xf32>
    %47 = arith.divf %43, %46 : vector<2x8x8xf32>
    "tpu.trace_start"() <{level = 10 : i32, message = "bqk,bkd->bqd"}> : () -> ()
    %cst_28 = arith.constant dense<0.000000e+00> : vector<2x8x32xf32>
    %48 = tpu.matmul %47, %37, %cst_28 {dimension_numbers = #tpu.dot_dimension_numbers<[2], [1], [1], [2], [0, 0, 0, 1, 1, 2], [0], [0]>} : vector<2x8x8xf32>, vector<2x8x32xf32>, vector<2x8x32xf32> -> vector<2x8x32xf32>
    "tpu.trace_stop"() : () -> ()
    %49 = vector.shape_cast %48 : vector<2x8x32xf32> to vector<16x32xf32>
    %c0_29 = arith.constant 0 : index
    %c32 = arith.constant 32 : index
    %50 = vector.load %arg8[%c0_29, %c32] : memref<16x128xf32, #tpu.memory_space<vmem>>, vector<16x32xf32>
    tpu.vector_store %arg8[%c0_29, %c32], %49 {strides = array<i32>} : memref<16x128xf32, #tpu.memory_space<vmem>>, vector<16x32xf32>,
    %51 = vector.extract_strided_slice %10 {offsets = [0, 0, 64], sizes = [2, 8, 32], strides = [1, 1, 1]} : vector<2x8x128xf32> to vector<2x8x32xf32>
    %52 = vector.extract_strided_slice %14 {offsets = [0, 0, 64], sizes = [2, 8, 32], strides = [1, 1, 1]} : vector<2x8x128xf32> to vector<2x8x32xf32>
    %53 = vector.extract_strided_slice %18 {offsets = [0, 0, 64], sizes = [2, 8, 32], strides = [1, 1, 1]} : vector<2x8x128xf32> to vector<2x8x32xf32>
    "tpu.trace_start"() <{level = 10 : i32, message = "bqd,bkd->bqk"}> : () -> ()
    %cst_30 = arith.constant dense<0.000000e+00> : vector<2x8x8xf32>
    %54 = tpu.matmul %51, %52, %cst_30 {dimension_numbers = #tpu.dot_dimension_numbers<[2], [2], [1], [1], [0, 0, 0, 1, 1, 1], [0], [0]>} : vector<2x8x32xf32>, vector<2x8x32xf32>, vector<2x8x8xf32> -> vector<2x8x8xf32>
    "tpu.trace_stop"() : () -> ()
    %cst_31 = arith.constant dense<0xFF800000> : vector<2x8xf32>
    %55 = vector.multi_reduction <maximumf>, %54, %cst_31 [2] : vector<2x8x8xf32> to vector<2x8xf32>
    %56 = vector.shape_cast %55 : vector<2x8xf32> to vector<2x8x1xf32>
    %57 = vector.broadcast %56 : vector<2x8x1xf32> to vector<2x8x8xf32>
    %58 = arith.subf %54, %57 : vector<2x8x8xf32>
    %59 = math.exp %58 : vector<2x8x8xf32>
    %cst_32 = arith.constant dense<0.000000e+00> : vector<2x8xf32>
    %60 = vector.multi_reduction <add>, %59, %cst_32 [2] : vector<2x8x8xf32> to vector<2x8xf32>
    %61 = vector.shape_cast %60 : vector<2x8xf32> to vector<2x8x1xf32>
    %62 = vector.broadcast %61 : vector<2x8x1xf32> to vector<2x8x8xf32>
    %63 = arith.divf %59, %62 : vector<2x8x8xf32>
    "tpu.trace_start"() <{level = 10 : i32, message = "bqk,bkd->bqd"}> : () -> ()
    %cst_33 = arith.constant dense<0.000000e+00> : vector<2x8x32xf32>
    %64 = tpu.matmul %63, %53, %cst_33 {dimension_numbers = #tpu.dot_dimension_numbers<[2], [1], [1], [2], [0, 0, 0, 1, 1, 2], [0], [0]>} : vector<2x8x8xf32>, vector<2x8x32xf32>, vector<2x8x32xf32> -> vector<2x8x32xf32>
    "tpu.trace_stop"() : () -> ()
    %65 = vector.shape_cast %64 : vector<2x8x32xf32> to vector<16x32xf32>
    %c0_34 = arith.constant 0 : index
    %c64 = arith.constant 64 : index
    %66 = vector.load %arg8[%c0_34, %c64] : memref<16x128xf32, #tpu.memory_space<vmem>>, vector<16x32xf32>
    tpu.vector_store %arg8[%c0_34, %c64], %65 {strides = array<i32>} : memref<16x128xf32, #tpu.memory_space<vmem>>, vector<16x32xf32>,
    %67 = vector.extract_strided_slice %10 {offsets = [0, 0, 96], sizes = [2, 8, 32], strides = [1, 1, 1]} : vector<2x8x128xf32> to vector<2x8x32xf32>
    %68 = vector.extract_strided_slice %14 {offsets = [0, 0, 96], sizes = [2, 8, 32], strides = [1, 1, 1]} : vector<2x8x128xf32> to vector<2x8x32xf32>
    %69 = vector.extract_strided_slice %18 {offsets = [0, 0, 96], sizes = [2, 8, 32], strides = [1, 1, 1]} : vector<2x8x128xf32> to vector<2x8x32xf32>
    "tpu.trace_start"() <{level = 10 : i32, message = "bqd,bkd->bqk"}> : () -> ()
    %cst_35 = arith.constant dense<0.000000e+00> : vector<2x8x8xf32>
    %70 = tpu.matmul %67, %68, %cst_35 {dimension_numbers = #tpu.dot_dimension_numbers<[2], [2], [1], [1], [0, 0, 0, 1, 1, 1], [0], [0]>} : vector<2x8x32xf32>, vector<2x8x32xf32>, vector<2x8x8xf32> -> vector<2x8x8xf32>
    "tpu.trace_stop"() : () -> ()
    %cst_36 = arith.constant dense<0xFF800000> : vector<2x8xf32>
    %71 = vector.multi_reduction <maximumf>, %70, %cst_36 [2] : vector<2x8x8xf32> to vector<2x8xf32>
    %72 = vector.shape_cast %71 : vector<2x8xf32> to vector<2x8x1xf32>
    %73 = vector.broadcast %72 : vector<2x8x1xf32> to vector<2x8x8xf32>
    %74 = arith.subf %70, %73 : vector<2x8x8xf32>
    %75 = math.exp %74 : vector<2x8x8xf32>
    %cst_37 = arith.constant dense<0.000000e+00> : vector<2x8xf32>
    %76 = vector.multi_reduction <add>, %75, %cst_37 [2] : vector<2x8x8xf32> to vector<2x8xf32>
    %77 = vector.shape_cast %76 : vector<2x8xf32> to vector<2x8x1xf32>
    %78 = vector.broadcast %77 : vector<2x8x1xf32> to vector<2x8x8xf32>
    %79 = arith.divf %75, %78 : vector<2x8x8xf32>
    "tpu.trace_start"() <{level = 10 : i32, message = "bqk,bkd->bqd"}> : () -> ()
    %cst_38 = arith.constant dense<0.000000e+00> : vector<2x8x32xf32>
    %80 = tpu.matmul %79, %69, %cst_38 {dimension_numbers = #tpu.dot_dimension_numbers<[2], [1], [1], [2], [0, 0, 0, 1, 1, 2], [0], [0]>} : vector<2x8x8xf32>, vector<2x8x32xf32>, vector<2x8x32xf32> -> vector<2x8x32xf32>
    "tpu.trace_stop"() : () -> ()
    %81 = vector.shape_cast %80 : vector<2x8x32xf32> to vector<16x32xf32>
    %c0_39 = arith.constant 0 : index
    %c96 = arith.constant 96 : index
    %82 = vector.load %arg8[%c0_39, %c96] : memref<16x128xf32, #tpu.memory_space<vmem>>, vector<16x32xf32>
    tpu.vector_store %arg8[%c0_39, %c96], %81 {strides = array<i32>} : memref<16x128xf32, #tpu.memory_space<vmem>>, vector<16x32xf32>,
    %c0_40 = arith.constant 0 : index
    %c0_41 = arith.constant 0 : index
    %83 = vector.load %arg8[%c0_40, %c0_41] : memref<16x128xf32, #tpu.memory_space<vmem>>, vector<16x128xf32>
    %c0_42 = arith.constant 0 : index
    %c0_43 = arith.constant 0 : index
    %84 = vector.load %arg5[%c0_42, %c0_43] : memref<128x32xf32, #tpu.memory_space<vmem>>, vector<128x32xf32>
    %cst_44 = arith.constant dense<0.000000e+00> : vector<16x32xf32>
    %85 = tpu.matmul %83, %84, %cst_44 {dimension_numbers = #tpu.dot_dimension_numbers<[1], [0], [0], [1], [0, 0, 1, 1], [], []>} : vector<16x128xf32>, vector<128x32xf32>, vector<16x32xf32> -> vector<16x32xf32>
    %c0_45 = arith.constant 0 : index
    %c0_46 = arith.constant 0 : index
    %86 = vector.load %arg6[%c0_45, %c0_46] : memref<1x32xf32, #tpu.memory_space<vmem>>, vector<1x32xf32>
    %87 = vector.broadcast %86 : vector<1x32xf32> to vector<16x32xf32>
    %88 = arith.addf %85, %87 : vector<16x32xf32>
    %89 = vector.shape_cast %88 : vector<16x32xf32> to vector<2x8x32xf32>
    %c0_47 = arith.constant 0 : index
    %c0_48 = arith.constant 0 : index
    %c0_49 = arith.constant 0 : index
    %90 = vector.load %arg7[%c0_47, %c0_48, %c0_49] : memref<2x8x32xf32, #tpu.memory_space<vmem>>, vector<2x8x32xf32>
    tpu.vector_store %arg7[%c0_47, %c0_48, %c0_49], %89 {strides = array<i32>} : memref<2x8x32xf32, #tpu.memory_space<vmem>>, vector<2x8x32xf32>,
    return
  }
  func.func @transform_0(%arg0: i32) -> (i32, i32, i32) {
    %c0_i32 = arith.constant 0 : i32
    %c0_i32_0 = arith.constant 0 : i32
    %c0_i32_1 = arith.constant 0 : i32
    %c0_i32_2 = arith.constant 0 : i32
    return %c0_i32, %c0_i32_0, %c0_i32_1 : i32, i32, i32
  }
  func.func @transform_1(%arg0: i32) -> (i32, i32, i32, i32) {
    %c0_i32 = arith.constant 0 : i32
    %c0_i32_0 = arith.constant 0 : i32
    %c0_i32_1 = arith.constant 0 : i32
    %c0_i32_2 = arith.constant 0 : i32
    %c0_i32_3 = arith.constant 0 : i32
    return %c0_i32, %c0_i32_0, %c0_i32_1, %c0_i32_2 : i32, i32, i32, i32
  }
  func.func @transform_2(%arg0: i32) -> (i32, i32) {
    %c0_i32 = arith.constant 0 : i32
    %c0_i32_0 = arith.constant 0 : i32
    %c0_i32_1 = arith.constant 0 : i32
    return %c0_i32, %c0_i32_0 : i32, i32
  }
  func.func @transform_3(%arg0: i32) -> (i32, i32, i32) {
    %c0_i32 = arith.constant 0 : i32
    %c0_i32_0 = arith.constant 0 : i32
    %c0_i32_1 = arith.constant 0 : i32
    %c0_i32_2 = arith.constant 0 : i32
    return %c0_i32, %c0_i32_0, %c0_i32_1 : i32, i32, i32
  }
  func.func @transform_4(%arg0: i32) -> (i32, i32) {
    %c0_i32 = arith.constant 0 : i32
    %c0_i32_0 = arith.constant 0 : i32
    %c0_i32_1 = arith.constant 0 : i32
    return %c0_i32, %c0_i32_0 : i32, i32
  }
  func.func @transform_5(%arg0: i32) -> (i32, i32) {
    %c0_i32 = arith.constant 0 : i32
    %c0_i32_0 = arith.constant 0 : i32
    %c0_i32_1 = arith.constant 0 : i32
    return %c0_i32, %c0_i32_0 : i32, i32
  }
  func.func @transform_6(%arg0: i32) -> (i32, i32, i32) {
    %c0_i32 = arith.constant 0 : i32
    %c0_i32_0 = arith.constant 0 : i32
    %c0_i32_1 = arith.constant 0 : i32
    %c0_i32_2 = arith.constant 0 : i32
    return %c0_i32, %c0_i32_0, %c0_i32_1 : i32, i32, i32
  }
}

</mosaic_0001>

<bundles_post_ra>
// kernel: tpu_custom_call.1
= control target key start
LH: loop header
LB: loop body
LE: loop exit
PB: predicated region body
PF: predicated region fallthrough
CT: control target
= control target key end

     0   :  { %vm35_vm0 = vcmask 261120   ;;  %s2386_s0 = inlined_call_operand.vmem [shape: f32[2,8,32], index: 0, kind: input, shape index: {}]   ;;  %s2387_s1 = inlined_call_operand.vmem [shape: f32[2,2,8,32], index: 1, kind: input, shape index: {}]   ;;  %s2388_s2 = inlined_call_operand.vmem [shape: f32[32,128], index: 2, kind: input, shape index: {}]   ;;  %s2389_s3 = inlined_call_operand.vmem [shape: f32[2,32,128], index: 3, kind: input, shape index: {}]   ;;  %s2390_s4 = inlined_call_operand.vmem [shape: f32[128,32], index: 4, kind: input, shape index: {}]   ;;  %s2391_s5 = inlined_call_operand.vmem [shape: f32[1,32], index: 5, kind: input, shape index: {}]   ;;  %s2392_s6 = inlined_call_operand.hbm [shape: f32[2,8,32], index: 6, kind: output, shape index: {}]  }
   0x1   :  { %v34_v0 = vld [vmem:[%s2388_s2 + $0x18] sm:$0xff]  ;;  %v33_v1 = vld [vmem:[%s2388_s2 + $0x10] sm:$0xff]  ;;  %v24_v2 = vld [vmem:[%s2386_s0] sm:$0xff] }
   0x2   :  { %1859 = vmatprep.subr.mxu1 %v34_v0  ;;  %v32_v3 = vld [vmem:[%s2388_s2 + $0x8] sm:$0xff]  ;;  %1867 = vmatprep.mubr.msk.f32.mxu1 %vm35_vm0, %v24_v2  ;;  %v31_v4 = vld [vmem:[%s2388_s2] sm:$0xff] }
   0x3   :  { %1860 = vmatpush3.msra.mxu1 %v34_v0 }
   0x4   :  { %1861 = vmatprep.subr.mxu1 %v33_v1 }
   0x5   :  { %1862 = vmatpush3.msra.mxu1 %v33_v1 }
   0x6   :  { %11 = vsyncpa [#allocation4], 0  ;;  %1863 = vmatprep.subr.mxu1 %v32_v3  ;;  %v25_v5 = vld [vmem:[%s2386_s0 + $0x8] sm:$0xff]  ;;  %v120_v6 = vld [vmem:[%s2389_s3 + $0x18] sm:$0xff]  ;;  %v2069_v18 = vmov 0.0   ;;  %vm2070_vm1 = vmmov 0  }
   0x7   :  { %1864 = vmatpush3.msra.mxu1 %v32_v3  ;;  %v26_v7 = vld [vmem:[%s2387_s1] sm:$0xff]  ;;  %v119_v8 = vld [vmem:[%s2389_s3 + $0x10] sm:$0xff]  ;;  %v118_v9 = vld [vmem:[%s2389_s3 + $0x8] sm:$0xff]  ;;  %1902 = vmatprep.subr.mxu0 %v2069_v18  ;;  %vm440_vm2 = vcmask 64512   ;;  %s2073_s7 = smov 32   ;;  %vm951_vm3 = vcmask 523520  }
   0x8   :  { %1865 = vmatprep.subr.mxu1 %v31_v4  ;;  %v117_v10 = vld [vmem:[%s2389_s3] sm:$0xff]  ;;  %v27_v11 = vld [vmem:[%s2387_s1 + $0x8] sm:$0xff]  ;;  %v1763_v12 = vld [vmem:[%s2389_s3 + $0x38] sm:$0xff]  ;;  %1904 = vmatprep.mubr.msk.f32.mxu0 %vm2070_vm1, %v2069_v18  ;;  %vm1292_vm4 = vcmask 785920   ;;  %vm1633_vm5 = vcmask 1048320   ;;  %s2074_s14 = smov [#allocation3]  }
   0x9   :  { %1866 = vmatpush3.msra.mxu1 %v31_v4  ;;  %v1762_v13 = vld [vmem:[%s2389_s3 + $0x30] sm:$0xff]  ;;  %v1761_v14 = vld [vmem:[%s2389_s3 + $0x28] sm:$0xff]  ;;  %v1760_v15 = vld [vmem:[%s2389_s3 + $0x20] sm:$0xff]  ;;  %s2072_s3 = smov 64   ;;  %s1743_s2 = sshll.u32 %s2074_s14, 4  ;;  %s1744_s2 = int_to_ptr.vmem [resolvable:$true] %s1743_s2 }
   0xa   :  { %1868 = vmatmul.mubr.msk.f32.vlgmr.msra.gmra.mxu1 %vm35_vm0, %v25_v5  ;;  %1870 = vmatprep.subr.mxu1 %v120_v6  ;;  %v1754_v16 = vld [vmem:[%s2387_s1 + $0x10] sm:$0xff]  ;;  %v1755_v17 = vld [vmem:[%s2387_s1 + $0x18] sm:$0xff]  ;;  %s2071_s1 = smov 96   ;;  %p2052_p1 = scmp.lt.s32.totalorder %s1744_s2, %s1744_s2 }
   0xb   :  { %1871 = vmatpush3.msra.mxu1 %v120_v6  ;;  %1878 = vmatprep.mubr.msk.f32.mxu1 %vm35_vm0, %v26_v7 }
   0xc   :  { %1872 = vmatprep.subr.mxu1 %v119_v8 }
   0xd   :  { %1873 = vmatpush3.msra.mxu1 %v119_v8 }
   0xe   :  { %1874 = vmatprep.subr.mxu1 %v118_v9 }
   0xf   :  { %1875 = vmatpush3.msra.mxu1 %v118_v9 }
  0x10   :  { %1876 = vmatprep.subr.mxu1 %v117_v10 }
  0x11   :  { %1877 = vmatpush3.msra.mxu1 %v117_v10 }
  0x12   :  { %1879 = vmatmul.mubr.msk.f32.vlgmr.msra.gmra.mxu1 %vm35_vm0, %v27_v11  ;;  %1881 = vmatprep.subr.mxu1 %v1763_v12 }
  0x13   :  { %1882 = vmatpush3.msra.mxu1 %v1763_v12  ;;  %1889 = vmatprep.mubr.msk.f32.mxu1 %vm35_vm0, %v1754_v16 }
  0x14   :  { %1883 = vmatprep.subr.mxu1 %v1762_v13 }
  0x15   :  { %1884 = vmatpush3.msra.mxu1 %v1762_v13 }
  0x16   :  { %1885 = vmatprep.subr.mxu1 %v1761_v14 }
  0x17   :  { %1886 = vmatpush3.msra.mxu1 %v1761_v14 }
  0x18   :  { %1887 = vmatprep.subr.mxu1 %v1760_v15 }
  0x19   :  { %1888 = vmatpush3.msra.mxu1 %v1760_v15 }
  0x1a   :  { %1890 = vmatmul.mubr.msk.f32.vlgmr.msra.gmra.mxu1 %vm35_vm0, %v1755_v17  ;;  %1892 = vmatprep.subr.mxu1 %v2069_v18 }
  0x1b   :  { %1894 = vmatprep.mubr.msk.f32.mxu1 %vm2070_vm1, %v2069_v18 }
  0xca   :  { %v2178_v19 = vpop.f32.mrf.mxu1 }
  0xcc   :  { %v2180_v20 = vpop.f32.mrf.mxu1 }
  0xd2   :  { %v2182_v21 = vpop.f32.mrf.mxu1 }
  0xd3   :  { %691 = vrot.lane.b32.xlu1 %v2182_v21, %s2071_s1 }
  0xd4   :  { %v2186_v22 = vpop.f32.mrf.mxu1 }
  0xd5   :  { %1893 = vmatpush3.xpose.msk.msra.mxu1 %vm35_vm0, %v2186_v22 }
  0xd6   :  { %1897 = vmatprep.subr.mxu1 %v2069_v18 }
  0xd7   :  { %611 = vrot.lane.b32.xlu1 %v2180_v20, %s2071_s1 }
  0xd8   :  { %1895 = vmatmul.mubr.msk.f32.vlgmr.msra.gmra.mxu1 %vm35_vm0, %v2180_v20 }
  0xd9   :  { %1898 = vmatpush3.xpose.msk.msra.mxu1 %vm35_vm0, %v2182_v21  ;;  %1899 = vmatprep.mubr.msk.f32.mxu1 %vm2070_vm1, %v2069_v18 }
  0xda   :  { %1907 = vmatprep.subr.mxu1 %v2069_v18  ;;  %v2204_v23 = vpop.f32.mrf.mxu1 }
  0xdc   :  { %1900 = vmatmul.mubr.msk.f32.vlgmr.msra.gmra.mxu1 %vm35_vm0, %v2178_v19  ;;  %v2207_v24 = vpop.f32.mrf.mxu1 }
  0xdd   :  { %1909 = vmatprep.mubr.msk.f32.mxu1 %vm2070_vm1, %v2069_v18  ;;  %1908 = vmatpush3.msra.mxu1 %v2204_v23 }
  0xde   :  { %1917 = vmatprep.subr.mxu1 %v2069_v18  ;;  %1903 = vmatpush3.msra.mxu0 %v2207_v24 }
  0xdf   :  { %1912 = vmatprep.subr.mxu0 %v2069_v18 }
 0x145   :  { %v692_v41 = vpop.permute.xlu1 %691 }
 0x149   :  { %v612_v42 = vpop.permute.xlu1 %611 }
 0x198   :  { %v360_v25 = vpop.f32.mrf.mxu1 }
 0x199   :  { %v441_v26 = vsel %vm440_vm2, %v360_v25, -inf }
 0x19a   :  { %442 = vmax.xlane.f32.xlu0 %v441_v26  ;;  %v1896_v27 = vpop.f32.mrf.mxu1 }
 0x19c   :  { %v436_v28 = vpop.f32.mrf.mxu1 }
 0x19d   :  { %v444_v29 = vsel %vm440_vm2, %v436_v28, -inf }
 0x19e   :  { %445 = vmax.xlane.f32.xlu0 %v444_v29  ;;  %v1901_v30 = vpop.f32.mrf.mxu1 }
 0x1b4   :  { %613 = vrot.lane.b32.xlu0 %v2186_v22, %s2071_s1 }
 0x223   :  { %v443_v31 = vpop.xlane.xlu0 %442 }
 0x224   :  { %v447_v32 = vsub.f32 %v360_v25, %v443_v31 }
 0x226   :  { %v449_v33 = vmul.f32 1.442695, %v447_v32 }
 0x227   :  { %v446_v34 = vpop.xlane.xlu0 %445 }
 0x228   :  { %2015 = vpow2.f32 %v449_v33  ;;  %v448_v35 = vsub.f32 %v436_v28, %v446_v34 }
 0x22a   :  { %v451_v36 = vmul.f32 1.442695, %v448_v35 }
 0x22b   :  { %v614_v47 = vpop.permute.xlu0 %613 }
 0x22c   :  { %2017 = vpow2.f32 %v451_v36 }
 0x235   :  { %v2016_v37 = vpop.eup %2015 }
 0x236   :  { %v453_v38 = vsel %vm440_vm2, %v2016_v37, 0.0 }
 0x237   :  { %454 = vadd.xlane.f32.xlu1 %v453_v38 }
 0x239   :  { %v2018_v39 = vpop.eup %2017 }
 0x23a   :  { %v456_v40 = vsel %vm440_vm2, %v2018_v39, 0.0 }
 0x23b   :  { %457 = vadd.xlane.f32.xlu1 %v456_v40 }
 0x24c   :  { %689 = vrot.lane.b32.xlu1 %v2178_v19, %s2071_s1 }
 0x2c0   :  { %v455_v43 = vpop.xlane.xlu1 %454 }
 0x2c1   :  { %2019 = vrcp.f32 %v455_v43 }
 0x2c4   :  { %v458_v44 = vpop.xlane.xlu1 %457 }
 0x2c5   :  { %2021 = vrcp.f32 %v458_v44 }
 0x2c8   :  { %v690_v50 = vpop.permute.xlu1 %689 }
 0x2ce   :  { %v2020_v45 = vpop.eup %2019 }
 0x2cf   :  { %v460_v46 = vmul.f32 %v2020_v45, %v2016_v37 }
 0x2d1   :  { %1905 = vmatmul.mubr.msk.f32.vlgmr.msra.gmra.mxu0 %vm440_vm2, %v460_v46 }
 0x2d2   :  { %v2022_v48 = vpop.eup %2021  ;;  %1913 = vmatpush3.xpose.msk.msra.mxu0 %vm35_vm0, %v614_v47  ;;  %1914 = vmatprep.mubr.msk.f32.mxu0 %vm2070_vm1, %v2069_v18 }
 0x2d3   :  { %v462_v49 = vmul.f32 %v2022_v48, %v2018_v39  ;;  %1922 = vmatprep.subr.mxu0 %v2069_v18 }
 0x2d5   :  { %1910 = vmatmul.mubr.msk.f32.vlgmr.msra.gmra.mxu1 %vm440_vm2, %v462_v49  ;;  %1915 = vmatmul.mubr.msk.f32.vlgmr.msra.gmra.mxu0 %vm35_vm0, %v612_v42 }
 0x2d6   :  { %1918 = vmatpush3.xpose.msk.msra.mxu1 %vm35_vm0, %v692_v41  ;;  %1919 = vmatprep.mubr.msk.f32.mxu1 %vm2070_vm1, %v2069_v18 }
 0x2d7   :  { %1927 = vmatprep.subr.mxu1 %v2069_v18  ;;  %1924 = vmatprep.mubr.msk.f32.mxu0 %vm2070_vm1, %v2069_v18 }
 0x2d9   :  { %1920 = vmatmul.mubr.msk.f32.vlgmr.msra.gmra.mxu1 %vm35_vm0, %v690_v50 }
 0x2da   :  { %1929 = vmatprep.mubr.msk.f32.mxu1 %vm2070_vm1, %v2069_v18 }
 0x391   :  { %v532_v51 = vpop.f32.mrf.mxu0 }
 0x392   :  { %609 = vst.msk [vmem:[#allocation2] sm:$0xff] %vm35_vm0, %v532_v51 }
 0x393   :  { %v1906_v52 = vpop.f32.mrf.mxu0 }
 0x395   :  { %v605_v53 = vpop.f32.mrf.mxu1  ;;  %v685_v54 = vpop.f32.mrf.mxu0 }
 0x396   :  { %610 = vst.msk [vmem:[#allocation2 + $0x8] sm:$0xff] %vm35_vm0, %v605_v53  ;;  %v767_v55 = vsel %vm440_vm2, %v685_v54, -inf }
 0x397   :  { %768 = vmax.xlane.f32.xlu0 %v767_v55  ;;  %v1911_v56 = vpop.f32.mrf.mxu1  ;;  %v1916_v57 = vpop.f32.mrf.mxu0 }
 0x399   :  { %v763_v58 = vpop.f32.mrf.mxu1 }
 0x39a   :  { %v770_v59 = vsel %vm440_vm2, %v763_v58, -inf }
 0x39b   :  { %771 = vmax.xlane.f32.xlu1 %v770_v59  ;;  %v1921_v60 = vpop.f32.mrf.mxu1 }
 0x3ac   :  { %867 = vrot.lane.b32.xlu1 %v2204_v23, %s2071_s1 }
 0x3ad   :  { %790 = vrot.lane.b32.xlu0 %v2207_v24, %s2071_s1 }
 0x3b0   :  { %956 = vrot.lane.b32.xlu1 %v2186_v22, %s2072_s3 }
 0x3b4   :  { %1034 = vrot.lane.b32.xlu1 %v2182_v21, %s2072_s3 }
 0x3b8   :  { %1032 = vrot.lane.b32.xlu1 %v2178_v19, %s2072_s3 }
 0x420   :  { %v769_v61 = vpop.xlane.xlu0 %768 }
 0x421   :  { %v773_v62 = vsub.f32 %v685_v54, %v769_v61 }
 0x423   :  { %v775_v63 = vmul.f32 1.442695, %v773_v62 }
 0x424   :  { %v791_v0 = vpop.permute.xlu0 %790  ;;  %v772_v1 = vpop.xlane.xlu1 %771 }
 0x425   :  { %2023 = vpow2.f32 %v775_v63  ;;  %v774_v2 = vsub.f32 %v763_v58, %v772_v1  ;;  %1923 = vmatpush3.msra.mxu0 %v791_v0 }
 0x426   :  { %1932 = vmatprep.subr.mxu0 %v2069_v18 }
 0x427   :  { %v777_v3 = vmul.f32 1.442695, %v774_v2 }
 0x428   :  { %v868_v4 = vpop.permute.xlu1 %867 }
 0x429   :  { %2025 = vpow2.f32 %v777_v3  ;;  %1928 = vmatpush3.msra.mxu1 %v868_v4 }
 0x42a   :  { %1937 = vmatprep.subr.mxu1 %v2069_v18 }
 0x42c   :  { %v957_v11 = vpop.permute.xlu1 %956 }
 0x430   :  { %v1035_v15 = vpop.permute.xlu1 %1034 }
 0x432   :  { %v2024_v5 = vpop.eup %2023 }
 0x433   :  { %v779_v6 = vsel %vm440_vm2, %v2024_v5, 0.0 }
 0x434   :  { %780 = vadd.xlane.f32.xlu0 %v779_v6  ;;  %v1033_v25 = vpop.permute.xlu1 %1032 }
 0x436   :  { %v2026_v7 = vpop.eup %2025 }
 0x437   :  { %v782_v8 = vsel %vm440_vm2, %v2026_v7, 0.0 }
 0x438   :  { %783 = vadd.xlane.f32.xlu0 %v782_v8 }
 0x44e   :  { %954 = vrot.lane.b32.xlu0 %v2180_v20, %s2072_s3 }
 0x4bd   :  { %v781_v9 = vpop.xlane.xlu0 %780 }
 0x4be   :  { %2027 = vrcp.f32 %v781_v9 }
 0x4c1   :  { %v784_v10 = vpop.xlane.xlu0 %783 }
 0x4c2   :  { %2029 = vrcp.f32 %v784_v10 }
 0x4c5   :  { %v955_v17 = vpop.permute.xlu0 %954 }
 0x4cb   :  { %v2028_v12 = vpop.eup %2027 }
 0x4cc   :  { %v786_v13 = vmul.f32 %v2028_v12, %v2024_v5 }
 0x4ce   :  { %1925 = vmatmul.mubr.msk.f32.vlgmr.msra.gmra.mxu0 %vm440_vm2, %v786_v13 }
 0x4cf   :  { %v2030_v14 = vpop.eup %2029  ;;  %1933 = vmatpush3.xpose.msk.msra.mxu0 %vm35_vm0, %v957_v11  ;;  %1934 = vmatprep.mubr.msk.f32.mxu0 %vm2070_vm1, %v2069_v18 }
 0x4d0   :  { %v788_v16 = vmul.f32 %v2030_v14, %v2026_v7  ;;  %1942 = vmatprep.subr.mxu0 %v2069_v18 }
 0x4d2   :  { %1930 = vmatmul.mubr.msk.f32.vlgmr.msra.gmra.mxu1 %vm440_vm2, %v788_v16  ;;  %1935 = vmatmul.mubr.msk.f32.vlgmr.msra.gmra.mxu0 %vm35_vm0, %v955_v17 }
 0x4d3   :  { %1938 = vmatpush3.xpose.msk.msra.mxu1 %vm35_vm0, %v1035_v15  ;;  %1939 = vmatprep.mubr.msk.f32.mxu1 %vm2070_vm1, %v2069_v18 }
 0x4d4   :  { %1947 = vmatprep.subr.mxu1 %v2069_v18  ;;  %1944 = vmatprep.mubr.msk.f32.mxu0 %vm2070_vm1, %v2069_v18 }
 0x4d6   :  { %1940 = vmatmul.mubr.msk.f32.vlgmr.msra.gmra.mxu1 %vm35_vm0, %v1033_v25 }
 0x4d7   :  { %1949 = vmatprep.mubr.msk.f32.mxu1 %vm2070_vm1, %v2069_v18 }
 0x58e   :  { %v2272_v26 = vpop.f32.mrf.mxu0 }
 0x590   :  { %v1926_v27 = vpop.f32.mrf.mxu0 }
 0x591   :  { %v1652_v27 = vld [vmem:[%s2390_s4 + $0x70] sm:$0xff] }
 0x592   :  { %v2274_v28 = vpop.f32.mrf.mxu1  ;;  %v1028_v29 = vpop.f32.mrf.mxu0 }
 0x593   :  { %v1110_v30 = vsel %vm440_vm2, %v1028_v29, -inf }
 0x594   :  { %1111 = vmax.xlane.f32.xlu0 %v1110_v30  ;;  %v1931_v31 = vpop.f32.mrf.mxu1  ;;  %v1936_v32 = vpop.f32.mrf.mxu0  ;;  %v1649_v30 = vld [vmem:[%s2390_s4 + $0x58] sm:$0xff] }
 0x595   :  { %v1648_v31 = vld [vmem:[%s2390_s4 + $0x50] sm:$0xff]  ;;  %v1647_v32 = vld [vmem:[%s2390_s4 + $0x48] sm:$0xff] }
 0x596   :  { %v1106_v33 = vpop.f32.mrf.mxu1 }
 0x597   :  { %v1113_v34 = vsel %vm440_vm2, %v1106_v33, -inf }
 0x598   :  { %1114 = vmax.xlane.f32.xlu1 %v1113_v34  ;;  %v1941_v35 = vpop.f32.mrf.mxu1  ;;  %v1645_v34 = vld [vmem:[%s2390_s4 + $0x38] sm:$0xff] }
 0x599   :  { %v1644_v35 = vld [vmem:[%s2390_s4 + $0x30] sm:$0xff] }
 0x5a9   :  { %1208 = vrot.lane.b32.xlu1 %v2204_v23, %s2072_s3 }
 0x5aa   :  { %1132 = vrot.lane.b32.xlu0 %v2207_v24, %s2072_s3 }
 0x5ad   :  { %1297 = vrot.lane.b32.xlu1 %v2186_v22, %s2073_s7 }
 0x5b1   :  { %1375 = vrot.lane.b32.xlu1 %v2182_v21, %s2073_s7 }
 0x5b5   :  { %1373 = vrot.lane.b32.xlu1 %v2178_v19, %s2073_s7 }
 0x61d   :  { %v1112_v36 = vpop.xlane.xlu0 %1111 }
 0x61e   :  { %v1116_v37 = vsub.f32 %v1028_v29, %v1112_v36  ;;  %v1650_v29 = vld [vmem:[%s2390_s4 + $0x60] sm:$0xff]  ;;  %v1643_v36 = vld [vmem:[%s2390_s4 + $0x28] sm:$0xff] }
 0x620   :  { %v1118_v38 = vmul.f32 1.442695, %v1116_v37  ;;  %v1642_v37 = vld [vmem:[%s2390_s4 + $0x20] sm:$0xff] }
 0x621   :  { %v1133_v39 = vpop.permute.xlu0 %1132  ;;  %v1115_v40 = vpop.xlane.xlu1 %1114 }
 0x622   :  { %2031 = vpow2.f32 %v1118_v38  ;;  %v1117_v41 = vsub.f32 %v1106_v33, %v1115_v40  ;;  %1943 = vmatpush3.msra.mxu0 %v1133_v39  ;;  %v1646_v33 = vld [vmem:[%s2390_s4 + $0x40] sm:$0xff]  ;;  %v1641_v38 = vld [vmem:[%s2390_s4 + $0x18] sm:$0xff]  ;;  %v1640_v39 = vld [vmem:[%s2390_s4 + $0x10] sm:$0xff] }
 0x623   :  { %1952 = vmatprep.subr.mxu0 %v2069_v18  ;;  %v1639_v40 = vld [vmem:[%s2390_s4 + $0x8] sm:$0xff] }
 0x624   :  { %v1120_v42 = vmul.f32 1.442695, %v1117_v41  ;;  %v1638_v41 = vld [vmem:[%s2390_s4] sm:$0xff] }
 0x625   :  { %v1209_v43 = vpop.permute.xlu1 %1208 }
 0x626   :  { %2033 = vpow2.f32 %v1120_v42  ;;  %1948 = vmatpush3.msra.mxu1 %v1209_v43 }
 0x627   :  { %1957 = vmatprep.subr.mxu1 %v2069_v18 }
 0x629   :  { %v1298_v47 = vpop.permute.xlu1 %1297 }
 0x62d   :  { %v1376_v51 = vpop.permute.xlu1 %1375 }
 0x62f   :  { %v2032_v21 = vpop.eup %2031 }
 0x630   :  { %v1122_v22 = vsel %vm440_vm2, %v2032_v21, 0.0 }
 0x631   :  { %1123 = vadd.xlane.f32.xlu0 %v1122_v22  ;;  %v1374_v53 = vpop.permute.xlu1 %1373 }
 0x633   :  { %v2034_v19 = vpop.eup %2033 }
 0x634   :  { %v1125_v44 = vsel %vm440_vm2, %v2034_v19, 0.0 }
 0x635   :  { %1126 = vadd.xlane.f32.xlu0 %v1125_v44 }
 0x64b   :  { %1295 = vrot.lane.b32.xlu0 %v2180_v20, %s2073_s7 }
 0x6ba   :  { %v1124_v45 = vpop.xlane.xlu0 %1123 }
 0x6bb   :  { %2035 = vrcp.f32 %v1124_v45 }
 0x6be   :  { %v1127_v46 = vpop.xlane.xlu0 %1126 }
 0x6bf   :  { %2037 = vrcp.f32 %v1127_v46 }
 0x6c2   :  { %v1296_v20 = vpop.permute.xlu0 %1295 }
 0x6c8   :  { %v2036_v48 = vpop.eup %2035 }
 0x6c9   :  { %v1129_v49 = vmul.f32 %v2036_v48, %v2032_v21 }
 0x6cb   :  { %1945 = vmatmul.mubr.msk.f32.vlgmr.msra.gmra.mxu0 %vm440_vm2, %v1129_v49 }
 0x6cc   :  { %v2038_v50 = vpop.eup %2037  ;;  %1953 = vmatpush3.xpose.msk.msra.mxu0 %vm35_vm0, %v1298_v47  ;;  %1954 = vmatprep.mubr.msk.f32.mxu0 %vm2070_vm1, %v2069_v18  ;;  %v1790_v47 = vld [vmem:[%s2391_s5] ss:$0 sm:$0xff] }
 0x6cd   :  { %v1131_v52 = vmul.f32 %v2038_v50, %v2034_v19  ;;  %1962 = vmatprep.subr.mxu0 %v2069_v18 }
 0x6cf   :  { %1950 = vmatmul.mubr.msk.f32.vlgmr.msra.gmra.mxu1 %vm440_vm2, %v1131_v52  ;;  %1955 = vmatmul.mubr.msk.f32.vlgmr.msra.gmra.mxu0 %vm35_vm0, %v1296_v20 }
 0x6d0   :  { %1958 = vmatpush3.xpose.msk.msra.mxu1 %vm35_vm0, %v1376_v51  ;;  %1959 = vmatprep.mubr.msk.f32.mxu1 %vm2070_vm1, %v2069_v18 }
 0x6d1   :  { %1967 = vmatprep.subr.mxu1 %v2069_v18  ;;  %1964 = vmatprep.mubr.msk.f32.mxu0 %vm2070_vm1, %v2069_v18 }
 0x6d3   :  { %1960 = vmatmul.mubr.msk.f32.vlgmr.msra.gmra.mxu1 %vm35_vm0, %v1374_v53 }
 0x6d4   :  { %1969 = vmatprep.mubr.msk.f32.mxu1 %vm2070_vm1, %v2069_v18 }
 0x78b   :  { %v1204_v54 = vpop.f32.mrf.mxu0 }
 0x78d   :  { %v1946_v55 = vpop.f32.mrf.mxu0 }
 0x78f   :  { %v1280_v56 = vpop.f32.mrf.mxu1  ;;  %v1369_v57 = vpop.f32.mrf.mxu0 }
 0x790   :  { %v1451_v58 = vsel %vm440_vm2, %v1369_v57, -inf }
 0x791   :  { %1452 = vmax.xlane.f32.xlu0 %v1451_v58  ;;  %v1951_v59 = vpop.f32.mrf.mxu1  ;;  %v1956_v60 = vpop.f32.mrf.mxu0 }
 0x793   :  { %v1447_v61 = vpop.f32.mrf.mxu1 }
 0x794   :  { %v1454_v62 = vsel %vm440_vm2, %v1447_v61, -inf }
 0x795   :  { %1455 = vmax.xlane.f32.xlu1 %v1454_v62  ;;  %v1961_v63 = vpop.f32.mrf.mxu1 }
 0x7a6   :  { %1549 = vrot.lane.b32.xlu1 %v2204_v23, %s2073_s7 }
 0x7aa   :  { %945 = vrot.lane.b32.xlu1 %v2272_v26, %s2073_s7 }
 0x7ae   :  { %947 = vrot.lane.b32.xlu1 %v2274_v28, %s2073_s7  ;;  %v1651_v28 = vld [vmem:[%s2390_s4 + $0x68] sm:$0xff] }
 0x7b2   :  { %1288 = vrot.lane.b32.xlu1 %v1280_v56, %s2072_s3 }
 0x81a   :  { %v1453_v18 = vpop.xlane.xlu0 %1452 }
 0x81b   :  { %v1457_v0 = vsub.f32 %v1369_v57, %v1453_v18 }
 0x81d   :  { %v1459_v1 = vmul.f32 1.442695, %v1457_v0 }
 0x81e   :  { %v1456_v2 = vpop.xlane.xlu1 %1455 }
 0x81f   :  { %2039 = vpow2.f32 %v1459_v1  ;;  %v1458_v3 = vsub.f32 %v1447_v61, %v1456_v2 }
 0x821   :  { %v1461_v4 = vmul.f32 1.442695, %v1458_v3 }
 0x822   :  { %v1550_v5 = vpop.permute.xlu1 %1549 }
 0x823   :  { %2041 = vpow2.f32 %v1461_v4  ;;  %1968 = vmatpush3.msra.mxu1 %v1550_v5 }
 0x826   :  { %v946_v23 = vpop.permute.xlu1 %945 }
 0x827   :  { %952 = vst.msk [vmem:[#allocation2] sm:$0xff] %vm951_vm3, %v946_v23 }
 0x82a   :  { %v948_v6 = vpop.permute.xlu1 %947 }
 0x82b   :  { %953 = vst.msk [vmem:[#allocation2 + $0x8] sm:$0xff] %vm951_vm3, %v948_v6 }
 0x82c   :  { %v2040_v7 = vpop.eup %2039 }
 0x82d   :  { %v1463_v8 = vsel %vm440_vm2, %v2040_v7, 0.0 }
 0x82e   :  { %1464 = vadd.xlane.f32.xlu0 %v1463_v8  ;;  %v1289_v9 = vpop.permute.xlu1 %1288 }
 0x82f   :  { %1294 = vst.msk [vmem:[#allocation2 + $0x8] sm:$0xff] %vm1292_vm4, %v1289_v9 }
 0x830   :  { %v2042_v10 = vpop.eup %2041 }
 0x831   :  { %v1466_v11 = vsel %vm440_vm2, %v2042_v10, 0.0 }
 0x832   :  { %1467 = vadd.xlane.f32.xlu0 %v1466_v11 }
 0x848   :  { %1473 = vrot.lane.b32.xlu0 %v2207_v24, %s2073_s7  ;;  %v1653_v24 = vld [vmem:[%s2390_s4 + $0x78] sm:$0xff] }
 0x84c   :  { %1286 = vrot.lane.b32.xlu0 %v1204_v54, %s2072_s3 }
 0x8b7   :  { %v1465_v12 = vpop.xlane.xlu0 %1464 }
 0x8b8   :  { %2043 = vrcp.f32 %v1465_v12 }
 0x8bb   :  { %v1468_v13 = vpop.xlane.xlu0 %1467 }
 0x8bc   :  { %2045 = vrcp.f32 %v1468_v13 }
 0x8bf   :  { %v1474_v14 = vpop.permute.xlu0 %1473 }
 0x8c0   :  { %1963 = vmatpush3.msra.mxu0 %v1474_v14 }
 0x8c1   :  { %1972 = vmatprep.subr.mxu0 %v1653_v24 }
 0x8c3   :  { %v1287_v15 = vpop.permute.xlu0 %1286 }
 0x8c4   :  { %1293 = vst.msk [vmem:[#allocation2] sm:$0xff] %vm1292_vm4, %v1287_v15 }
 0x8c5   :  { %v2044_v16 = vpop.eup %2043 }
 0x8c6   :  { %v1470_v17 = vmul.f32 %v2044_v16, %v2040_v7 }
 0x8c8   :  { %1965 = vmatmul.mubr.msk.f32.vlgmr.msra.gmra.mxu0 %vm440_vm2, %v1470_v17 }
 0x8c9   :  { %v2046_v25 = vpop.eup %2045  ;;  %1973 = vmatpush3.msra.mxu0 %v1653_v24 }
 0x8ca   :  { %v1472_v26 = vmul.f32 %v2046_v25, %v2042_v10  ;;  %1974 = vmatprep.subr.mxu0 %v1652_v27 }
 0x8cb   :  { %1975 = vmatpush3.msra.mxu0 %v1652_v27 }
 0x8cc   :  { %1970 = vmatmul.mubr.msk.f32.vlgmr.msra.gmra.mxu1 %vm440_vm2, %v1472_v26  ;;  %1976 = vmatprep.subr.mxu0 %v1651_v28 }
 0x8cd   :  { %1977 = vmatpush3.msra.mxu0 %v1651_v28 }
 0x8ce   :  { %1978 = vmatprep.subr.mxu0 %v1650_v29 }
 0x8cf   :  { %1979 = vmatpush3.msra.mxu0 %v1650_v29 }
 0x8d0   :  { %1980 = vmatprep.subr.mxu0 %v1649_v30 }
 0x8d1   :  { %1981 = vmatpush3.msra.mxu0 %v1649_v30 }
 0x8d2   :  { %1982 = vmatprep.subr.mxu0 %v1648_v31 }
 0x8d3   :  { %1983 = vmatpush3.msra.mxu0 %v1648_v31 }
 0x8d4   :  { %1984 = vmatprep.subr.mxu0 %v1647_v32 }
 0x8d5   :  { %1985 = vmatpush3.msra.mxu0 %v1647_v32 }
 0x8d6   :  { %1986 = vmatprep.subr.mxu0 %v1646_v33 }
 0x8d7   :  { %1987 = vmatpush3.msra.mxu0 %v1646_v33 }
 0x8d8   :  { %1988 = vmatprep.subr.mxu0 %v1645_v34 }
 0x8d9   :  { %1989 = vmatpush3.msra.mxu0 %v1645_v34 }
 0x8da   :  { %1990 = vmatprep.subr.mxu0 %v1644_v35 }
 0x8db   :  { %1991 = vmatpush3.msra.mxu0 %v1644_v35 }
 0x8dc   :  { %1992 = vmatprep.subr.mxu0 %v1643_v36 }
 0x8dd   :  { %1993 = vmatpush3.msra.mxu0 %v1643_v36 }
 0x8de   :  { %1994 = vmatprep.subr.mxu0 %v1642_v37 }
 0x8df   :  { %1995 = vmatpush3.msra.mxu0 %v1642_v37 }
 0x8e0   :  { %1996 = vmatprep.subr.mxu0 %v1641_v38 }
 0x8e1   :  { %1997 = vmatpush3.msra.mxu0 %v1641_v38 }
 0x8e2   :  { %1998 = vmatprep.subr.mxu0 %v1640_v39 }
 0x8e3   :  { %1999 = vmatpush3.msra.mxu0 %v1640_v39 }
 0x8e4   :  { %2000 = vmatprep.subr.mxu0 %v1639_v40 }
 0x8e5   :  { %2001 = vmatpush3.msra.mxu0 %v1639_v40 }
 0x8e6   :  { %2002 = vmatprep.subr.mxu0 %v1638_v41 }
 0x8e7   :  { %2003 = vmatpush3.msra.mxu0 %v1638_v41 }
 0x988   :  { %v1545_v42 = vpop.f32.mrf.mxu0 }
 0x989   :  { %1627 = vrot.lane.b32.xlu0 %v1545_v42, %s2071_s1 }
 0x98a   :  { %v1966_v43 = vpop.f32.mrf.mxu0 }
 0x98c   :  { %v1621_v21 = vpop.f32.mrf.mxu1 }
 0x98d   :  { %1629 = vrot.lane.b32.xlu1 %v1621_v21, %s2071_s1  ;;  %s2047_s1 = scalar_lea.vmem %s1744_s2, 256 }
 0x98e   :  { %v1971_v22 = vpop.f32.mrf.mxu1  ;;  %p2048_p0 = scmp.ne.s32.totalorder %s1744_s2, %s2047_s1  ;;  %p2053_p2 = scmp.lt.s32.totalorder %s2047_s1, %s2047_s1 }
 0x990   :  { %p2054_p3 = por %p2053_p2, %p2052_p1 }
 0x992   :  { %p2055_p4 = pnand %p2054_p3, %p2048_p0 }
 0x9fb   :  { %v1628_v19 = vpop.permute.xlu0 %1627 }
 0x9fc   :  { %1634 = vst.msk [vmem:[#allocation2] sm:$0xff] %vm1633_vm5, %v1628_v19 }
 0x9ff   :  { %v1630_v44 = vpop.permute.xlu1 %1629 }
 0xa00   :  { %1635 = vst.msk [vmem:[#allocation2 + $0x8] sm:$0xff] %vm1633_vm5, %v1630_v44 }
 0xa03   :  { %v1636_v45 = vld [vmem:[#allocation2] sm:$0xff] }
 0xa04   :  { %2004 = vmatprep.mubr.f32.mxu0 %v1636_v45 }
 0xa07   :  { %v1637_v46 = vld [vmem:[#allocation2 + $0x8] sm:$0xff] }
 0xa08   :  { %2005 = vmatmul.mubr.f32.vlgmr.msra.gmra.mxu0 %v1637_v46 }
 0xac8   :  { %v2006_v48 = vpop.f32.mrf.mxu0 }
 0xac9   :  { %v1733_v49 = vadd.f32 %v2006_v48, %v1790_v47 }
 0xaca   :  { %v1727_v50 = vpop.f32.mrf.mxu0 }
 0xacb   :  { %1737 = vst.msk [vmem:[#allocation3 + $0x8] sm:$0xff] %vm35_vm0, %v1733_v49  ;;  %v1728_v51 = vadd.f32 %v1790_v47, %v1727_v50 }
 0xacd   :  { %1736 = vst.msk [vmem:[#allocation3] sm:$0xff] %vm35_vm0, %v1728_v51 }
 0xace   :  { %2058 = shalt.err (!%p2055_p4)
}
 0xacf   :  { %s2075_s0 = smov 128   ;;  %s2076_s5 = smov 8  }
 0xad0   :  { %1749 = dma.vmem_to_hbm [thread:$0]  %s1744_s2, 256, %s2392_s6, [#allocation4], %s2075_s0, %s2075_s0, %s2076_s5  }
 0xad1   :  { %2067 = dma.done.wait [#allocation4], 256  }
 0xad2   :  { %2068 = vsyncadd [#allocation4], 4294967040 }
 0xad3   :  { %1753 = vsyncpa [#allocation4], 1 }

</bundles_post_ra>
